<compile_context>
chip_gen: v7x
topology: tpu7x:2x2x1
jax: 0.10.0
libtpu: 0.0.40
codegen_flags: <defaults>
</compile_context>

<pallas_src>
import functools

import jax
import jax.numpy as jnp
from jax import lax
from jax.experimental import pallas as pl
from jax.experimental.pallas import tpu as pltpu

BN_EPS = 1e-5


# --------------------------------------------------------------------------------------
# kernels
# --------------------------------------------------------------------------------------
def _stats_kernel(x_ref, w_ref, stats_ref, *, hw, tl, needs_mask):
    # x_ref: (1, Cin, TL) input dtype; w_ref: (Cout, Cin); stats_ref: (1, 1, Cout, 2) f32
    y = jnp.dot(w_ref[...], x_ref[0], preferred_element_type=jnp.float32)   # (Cout, TL) f32
    if needs_mask:
        lane = lax.broadcasted_iota(jnp.int32, y.shape, 1)
        y = jnp.where(pl.program_id(1) * tl + lane < hw, y, 0.0)
    s0 = jnp.sum(y, axis=-1, keepdims=True)                                 # (Cout, 1)
    s1 = jnp.sum(y * y, axis=-1, keepdims=True)                             # (Cout, 1)
    stats_ref[0, 0] = jnp.concatenate([s0, s1], axis=-1)


def _stats_store_kernel(x_ref, w_ref, y_out_ref, stats_ref, *, hw, tl, needs_mask):
    # Same as _stats_kernel but also writes y back to HBM (projection layers: Cout < Cin/2).
    y = jnp.dot(w_ref[...], x_ref[0], preferred_element_type=jnp.float32)   # (Cout, TL) f32
    y_out_ref[0] = y.astype(y_out_ref.dtype)
    if needs_mask:
        lane = lax.broadcasted_iota(jnp.int32, y.shape, 1)
        y = jnp.where(pl.program_id(1) * tl + lane < hw, y, 0.0)
    s0 = jnp.sum(y, axis=-1, keepdims=True)
    s1 = jnp.sum(y * y, axis=-1, keepdims=True)
    stats_ref[0, 0] = jnp.concatenate([s0, s1], axis=-1)


def _apply_recompute_kernel(x_ref, w_ref, scale_ref, shift_ref, alpha_ref, o_ref, *, fold_scale):
    # Recompute the cheap K=Cin 1x1 conv and apply the (pre-folded) BN affine + PReLU.
    y = jnp.dot(w_ref[...], x_ref[0], preferred_element_type=jnp.float32)   # (Cout, TL) f32
    if fold_scale:
        z = y + shift_ref[...]                    # scale already folded into the f32 weight
    else:
        z = y * scale_ref[...] + shift_ref[...]   # bf16 weights: keep scale in f32 post-matmul
    o_ref[0] = jnp.where(z >= 0.0, z, alpha_ref[...] * z).astype(o_ref.dtype)


def _apply_from_y_kernel(y_ref, scale_ref, shift_ref, alpha_ref, o_ref):
    # Projection-layer path: read back y from HBM instead of recomputing the conv.
    z = y_ref[0].astype(jnp.float32) * scale_ref[...] + shift_ref[...]
    o_ref[0] = jnp.where(z >= 0.0, z, alpha_ref[...] * z).astype(o_ref.dtype)


# --------------------------------------------------------------------------------------
# tiling helpers
# --------------------------------------------------------------------------------------
def _vmem_capacity_bytes():
    try:
        return int(getattr(pltpu.get_tpu_info(), "vmem_capacity_bytes", 64 << 20))
    except Exception:
        return 64 << 20   # conservative (v7x)


def _choose_tile(hw, cin, cout, itemsize, vmem_cap):
    """Pick a lane-dense spatial tile TL. Returns (TL, grid_j, needs_mask)."""
    if hw <= 128:
        return hw, 1, False
    # Budget for all pipelined buffers: ~VMEM/4 (16 MiB on v7x, 32 MiB on v5e/v6e).
    budget = max(vmem_cap // 4, 8 << 20)
    fixed = 2 * cout * cin * 4 + (1 << 16)                               # weight buffers + params/stats
    per_px = 2 * cin * itemsize + 4 * cout * itemsize + 8 * cout         # x(2x) + y/out blocks + f32 temps
    hw_pad = ((hw + 127) // 128) * 128
    tl_max = min(max((budget - fixed) // per_px, 128) // 128 * 128, hw_pad)
    tl_max = max(tl_max, 128)
    # Prefer the largest multiple-of-128 divisor of hw (avoids a masked tail block).
    t = tl_max
    while t >= 128:
        if hw % t == 0:
            return t, hw // t, False
        t -= 128
    tl = max(128, min(tl_max, (hw // 128) * 128))                        # never exceed the array extent
    return tl, pl.cdiv(hw, tl), True


# --------------------------------------------------------------------------------------
# wrapper
# --------------------------------------------------------------------------------------
def conv_bn_prelu(x_nchw, conv_weight, gamma, beta, alpha):
    """x_nchw: (N, Cin, H, W); conv_weight: (Cout, Cin, 1, 1); gamma/beta/alpha: (Cout,)."""
    # TODO(synk): only the module's default config (kernel=(1,1), stride=1, padding=0, groups=1)
    # is implemented; general kxk / strided / grouped conv would need im2col.
    N, Cin, H, W = x_nchw.shape
    Cout = conv_weight.shape[0]
    HW = H * W
    M = N * HW
    dtype = x_nchw.dtype
    itemsize = jnp.dtype(dtype).itemsize

    # NCHW -> (N, Cin, H*W): contiguous reshape, no transpose / extra HBM pass.
    x3d = x_nchw.reshape(N, Cin, HW)
    w_f32 = conv_weight[:, :, 0, 0].astype(jnp.float32)                  # (Cout, Cin)
    w2d = w_f32.astype(dtype)

    vmem_cap = _vmem_capacity_bytes()
    TL, GJ, needs_mask = _choose_tile(HW, Cin, Cout, itemsize, vmem_cap)
    needed = (2 * Cout * Cin * 4 + (1 << 16)
              + TL * (2 * Cin * itemsize + 4 * Cout * itemsize + 8 * Cout))
    vmem_limit = int(min(max(needed + (4 << 20), 16 << 20), (vmem_cap * 3) // 4))

    grid = (N, GJ)
    x_spec = pl.BlockSpec((1, Cin, TL), lambda n, j: (n, 0, j))
    w_spec = pl.BlockSpec((Cout, Cin), lambda n, j: (0, 0))
    y_spec = pl.BlockSpec((1, Cout, TL), lambda n, j: (n, 0, j))
    vec_spec = pl.BlockSpec((Cout, 1), lambda n, j: (0, 0))
    stats_spec = pl.BlockSpec((1, 1, Cout, 2), lambda n, j: (n, j, 0, 0))

    cparams = pltpu.CompilerParams(
        dimension_semantics=("parallel", "parallel"),
        vmem_limit_bytes=vmem_limit)

    # HBM bytes/pixel: recompute = 2*Cin + Cout; store-y = Cin + 3*Cout. Pick the smaller.
    store_y = (2 * Cout) < Cin

    # ---- pass 1: per-(batch, spatial-tile) partial sum(y) / sum(y^2) ----
    if store_y:
        y3d, partial = pl.pallas_call(
            functools.partial(_stats_store_kernel, hw=HW, tl=TL, needs_mask=needs_mask),
            out_shape=(jax.ShapeDtypeStruct((N, Cout, HW), dtype),
                       jax.ShapeDtypeStruct((N, GJ, Cout, 2), jnp.float32)),
            grid_spec=pltpu.PrefetchScalarGridSpec(
                num_scalar_prefetch=0, grid=grid,
                in_specs=[x_spec, w_spec],
                out_specs=[y_spec, stats_spec]),
            compiler_params=cparams,
        )(x3d, w2d)
    else:
        partial = pl.pallas_call(
            functools.partial(_stats_kernel, hw=HW, tl=TL, needs_mask=needs_mask),
            out_shape=jax.ShapeDtypeStruct((N, GJ, Cout, 2), jnp.float32),
            grid_spec=pltpu.PrefetchScalarGridSpec(
                num_scalar_prefetch=0, grid=grid,
                in_specs=[x_spec, w_spec],
                out_specs=stats_spec),
            compiler_params=cparams,
        )(x3d, w2d)

    # ---- tiny finish-reduction + all BN folding math, done once in the wrapper ----
    sums = jnp.sum(partial, axis=(0, 1))                                  # (Cout, 2) f32
    mean = sums[:, 0] * (1.0 / M)
    var = jnp.maximum(sums[:, 1] * (1.0 / M) - mean * mean, 0.0)          # clamp f32 cancellation
    scale = gamma.astype(jnp.float32) * lax.rsqrt(var + BN_EPS)           # (Cout,)
    shift = beta.astype(jnp.float32) - mean * scale
    scale2d = scale.reshape(Cout, 1)
    shift2d = shift.reshape(Cout, 1)
    alpha2d = alpha.reshape(Cout, 1).astype(jnp.float32)

    # ---- pass 2: normalize + PReLU ----
    if store_y:
        out3d = pl.pallas_call(
            _apply_from_y_kernel,
            out_shape=jax.ShapeDtypeStruct((N, Cout, HW), dtype),
            grid_spec=pltpu.PrefetchScalarGridSpec(
                num_scalar_prefetch=0, grid=grid,
                in_specs=[y_spec, vec_spec, vec_spec, vec_spec],
                out_specs=y_spec),
            compiler_params=cparams,
        )(y3d, scale2d, shift2d, alpha2d)
    else:
        fold_scale = (dtype == jnp.float32)
        w_pass2 = (w_f32 * scale2d).astype(dtype) if fold_scale else w2d
        out3d = pl.pallas_call(
            functools.partial(_apply_recompute_kernel, fold_scale=fold_scale),
            out_shape=jax.ShapeDtypeStruct((N, Cout, HW), dtype),
            grid_spec=pltpu.PrefetchScalarGridSpec(
                num_scalar_prefetch=0, grid=grid,
                in_specs=[x_spec, w_spec, vec_spec, vec_spec, vec_spec],
                out_specs=y_spec),
            compiler_params=cparams,
        )(x3d, w_pass2, scale2d, shift2d, alpha2d)

    # (N, Cout, H*W) -> (N, Cout, H, W): free reshape, already NCHW ordered.
    return out3d.reshape(N, Cout, H, W)


# --------------------------------------------------------------------------------------
# pure-JAX reference (PyTorch training-mode BN semantics)
# --------------------------------------------------------------------------------------
def conv_bn_prelu_ref(x_nchw, conv_weight, gamma, beta, alpha):
    y = lax.conv_general_dilated(
        x_nchw.astype(jnp.float32), conv_weight.astype(jnp.float32),
        window_strides=(1, 1), padding="VALID",
        dimension_numbers=("NCHW", "OIHW", "NCHW"))
    mean = jnp.mean(y, axis=(0, 2, 3), keepdims=True)
    var = jnp.mean((y - mean) ** 2, axis=(0, 2, 3), keepdims=True)
    z = (y - mean) / jnp.sqrt(var + BN_EPS)
    z = z * gamma.reshape(1, -1, 1, 1) + beta.reshape(1, -1, 1, 1)
    a = alpha.reshape(1, -1, 1, 1)
    return jnp.where(z >= 0.0, z, a * z)


if __name__ == "__main__":
    def _run_case(key, n, cin, cout, h, w, dtype, atol, rtol):
        kx, kw = jax.random.split(key)
        x = jax.random.normal(kx, (n, cin, h, w), dtype=jnp.float32)
        wgt = jax.random.normal(kw, (cout, cin, 1, 1), dtype=jnp.float32) * 0.1
        gamma = jnp.ones((cout,), jnp.float32)          # BatchNorm2d defaults
        beta = jnp.zeros((cout,), jnp.float32)
        alpha = jnp.full((cout,), 0.25, jnp.float32)    # PReLU(out_c) default init

        out = conv_bn_prelu(x.astype(dtype), wgt.astype(dtype), gamma, beta, alpha)
        out = jax.block_until_ready(out)

        ref = conv_bn_prelu_ref(x.astype(dtype).astype(jnp.float32),
                                wgt.astype(dtype).astype(jnp.float32), gamma, beta, alpha)
        assert out.shape == (n, cout, h, w)
        err = float(jnp.max(jnp.abs(out.astype(jnp.float32) - ref)))
        assert jnp.allclose(out.astype(jnp.float32), ref, atol=atol, rtol=rtol), err

    keys = jax.random.split(jax.random.PRNGKey(0), 4)
    # expansion config (recompute path, scale folded into the f32 weight)
    _run_case(keys[0], 2, 4, 8, 16, 16, jnp.float32, 1e-4, 1e-4)
    # projection config (Cout < Cin/2 -> store-y path), HW < 128 single tile
    _run_case(keys[1], 2, 16, 4, 7, 7, jnp.float32, 1e-4, 1e-4)
    # H*W with no multiple-of-128 divisor (cdiv tiling + masked stats tail)
    _run_case(keys[2], 2, 4, 8, 12, 12, jnp.float32, 1e-4, 1e-4)
    # bf16 inputs (post-matmul f32 scale path)
    _run_case(keys[3], 2, 4, 8, 16, 16, jnp.bfloat16, 3e-2, 3e-2)

    print("KERNEL_OK")
</pallas_src>

<mosaic_0001>
module attributes {stable_mosaic.version = 11 : i64} {
  func.func @_stats_kernel(%arg0: i32, %arg1: i32, %arg2: memref<1x4x256xf32, #tpu.memory_space<vmem>>, %arg3: memref<8x4xf32, #tpu.memory_space<vmem>>, %arg4: memref<1x1x8x2xf32, #tpu.memory_space<vmem>>) attributes {dimension_semantics = [#tpu.dimension_semantics<parallel>, #tpu.dimension_semantics<parallel>], iteration_bounds = array<i64: 2, 1>, scalar_prefetch = 0 : i64, scratch_operands = 0 : i64, tpu.core_type = #tpu.core_type<tc>, window_params = [{transform_indices = @transform_0, window_bounds = array<i64: 1, 4, 256>}, {pipeline_mode = #tpu.pipeline_mode<synchronous>, transform_indices = @transform_1, window_bounds = array<i64: 8, 4>}, {transform_indices = @transform_2, window_bounds = array<i64: 1, 1, 8, 2>}]} {
    %c0 = arith.constant 0 : index
    %c0_0 = arith.constant 0 : index
    %0 = vector.load %arg3[%c0, %c0_0] : memref<8x4xf32, #tpu.memory_space<vmem>>, vector<8x4xf32>
    %c0_1 = arith.constant 0 : index
    %c0_2 = arith.constant 0 : index
    %c0_3 = arith.constant 0 : index
    %1 = vector.load %arg2[%c0_1, %c0_2, %c0_3] : memref<1x4x256xf32, #tpu.memory_space<vmem>>, vector<1x4x256xf32>
    %2 = vector.shape_cast %1 : vector<1x4x256xf32> to vector<4x256xf32>
    %cst = arith.constant dense<0.000000e+00> : vector<8x256xf32>
    %3 = tpu.matmul %0, %2, %cst {dimension_numbers = #tpu.dot_dimension_numbers<[1], [0], [0], [1], [0, 0, 1, 1], [], []>} : vector<8x4xf32>, vector<4x256xf32>, vector<8x256xf32> -> vector<8x256xf32>
    %cst_4 = arith.constant dense<0.000000e+00> : vector<8xf32>
    %4 = vector.multi_reduction <add>, %3, %cst_4 [1] : vector<8x256xf32> to vector<8xf32>
    %5 = vector.shape_cast %4 : vector<8xf32> to vector<8x1xf32>
    %6 = arith.mulf %3, %3 : vector<8x256xf32>
    %cst_5 = arith.constant dense<0.000000e+00> : vector<8xf32>
    %7 = vector.multi_reduction <add>, %6, %cst_5 [1] : vector<8x256xf32> to vector<8xf32>
    %8 = vector.shape_cast %7 : vector<8xf32> to vector<8x1xf32>
    %9 = tpu.concatenate %5, %8 in 1 : vector<8x1xf32>, vector<8x1xf32> -> vector<8x2xf32>
    %c0_6 = arith.constant 0 : index
    %c0_7 = arith.constant 0 : index
    %c0_8 = arith.constant 0 : index
    %c0_9 = arith.constant 0 : index
    %10 = vector.load %arg4[%c0_6, %c0_7, %c0_8, %c0_9] : memref<1x1x8x2xf32, #tpu.memory_space<vmem>>, vector<1x1x8x2xf32>
    %11 = vector.shape_cast %10 : vector<1x1x8x2xf32> to vector<8x2xf32>
    %12 = vector.shape_cast %9 : vector<8x2xf32> to vector<1x1x8x2xf32>
    tpu.vector_store %arg4[%c0_6, %c0_7, %c0_8, %c0_9], %12 {strides = array<i32>} : memref<1x1x8x2xf32, #tpu.memory_space<vmem>>, vector<1x1x8x2xf32>,
    return
  }
  func.func @transform_0(%arg0: i32, %arg1: i32) -> (i32, i32, i32) {
    %c0_i32 = arith.constant 0 : i32
    %c0_i32_0 = arith.constant 0 : i32
    return %arg0, %c0_i32, %arg1 : i32, i32, i32
  }
  func.func @transform_1(%arg0: i32, %arg1: i32) -> (i32, i32) {
    %c0_i32 = arith.constant 0 : i32
    %c0_i32_0 = arith.constant 0 : i32
    %c0_i32_1 = arith.constant 0 : i32
    return %c0_i32, %c0_i32_0 : i32, i32
  }
  func.func @transform_2(%arg0: i32, %arg1: i32) -> (i32, i32, i32, i32) {
    %c0_i32 = arith.constant 0 : i32
    %c0_i32_0 = arith.constant 0 : i32
    %c0_i32_1 = arith.constant 0 : i32
    return %arg0, %arg1, %c0_i32, %c0_i32_0 : i32, i32, i32, i32
  }
}

</mosaic_0001>

<bundles_post_ra>
// kernel: tpu_custom_call.1
= control target key start
LH: loop header
LB: loop body
LE: loop exit
PB: predicated region body
PF: predicated region fallthrough
CT: control target
= control target key end

     0   :  { %7 = vsyncpa [#allocation3], 0  ;;  %s667_s0 = inlined_call_operand.hbm [shape: f32[2,4,256], index: 0, kind: input, shape index: {}]   ;;  %s668_s1 = inlined_call_operand.vmem [shape: f32[8,4], index: 1, kind: input, shape index: {}]   ;;  %s669_s2 = inlined_call_operand.vmem [shape: f32[2,1,8,2], index: 2, kind: output, shape index: {}]  }
   0x1   :  { %9 = vsyncpa [#allocation3 + $0x1], 0  ;;  %s539_s9 = smov 0   ;;  %s541_s10 = smov 0  }
   0x2   :  { %s543_s11 = smov 0   ;;  %s545_s12 = smov 0  }
   0x3   :  { %s547_s13 = smov 0   ;;  %s549_s14 = smov 0  }
   0x4 LB: > { %s367_s15 = sadd.s32 4294967295, %s520_s14   ;;  %s27_s16 = sadd.s32 1, %s516_s13  ;;  %s520_s14 = sphi %s549_s14, %s15_s14   ;;  %s516_s13 = sphi %s547_s13, %s679_s13   ;;  %s512_s12 = sphi %s545_s12, %s678_s12   ;;  %s508_s11 = sphi %s543_s11, %s677_s11   ;;  %s504_s10 = sphi %s541_s10, %s676_s10   ;;  %s500_s9 = sphi %s539_s9, %s675_s9  }
   0x5   : > { %p29_p0 = scmp.ge.s32.totalorder %s27_s16, 2  ;;  %s36_s17 = sadd.s32 1, %s508_s11 }
   0x6   : > { %p43_p1 = scmp.ne.s32.totalorder %s508_s11, %s504_s10  ;;  %p44_p2 = scmp.eq.s32.totalorder %s520_s14, 0 }
   0x7   : > { %s681_s16 = smov (%p29_p0, %s27_s16), 0  ;;  %p49_p4 = scmp.ne.s32.totalorder %s504_s10, %s500_s9 }
   0x8   : > { %p575_p3 = por %p44_p2, %p43_p1  ;;  %s31_s19 = ssub.s32 %s516_s13, %s681_s16 }
   0x9   : > { %p50_p5 = scmp.eq.s32.totalorder %s367_s15, 0  ;;  %p34_p6 = scmp.eq.s32.totalorder %s31_s19, 0 }
   0xa   : > { %p389_p8 = scmp.lt.s32.totalorder %s520_s14, 2  ;;  %s125_s22 = sand.u32 1, %s508_s11  }
   0xb   : > { %p582_p7 = por %p50_p5, %p49_p4  ;;  %s382_s23 = sshll.u32 %s516_s13, 7 }
   0xc   : > { %s588_s21 = scalar_select %p34_p6, %s508_s11, %s36_s17  }
   0xd   : > { %s371_s24 = sshll.u32 %s125_s22, 3  ;;  %s595_s27 = scalar_lea.hbm %s667_s0, %s382_s23 }
   0xe   : > { %s129_s28 = scalar_lea.vmem [#allocation2], %s371_s24  ;;  %p599_p9 = pnand %p389_p8, %p575_p3 }
   0xf   : > { %s139_s29 = sshll.u32 %s129_s28, 4  ;;  %s126_s3 = scalar_lea.sflag [#allocation3], %s125_s22  ;;  %s603_s29 = int_to_ptr.vmem [resolvable:$true] %s139_s29 }
  0x10   : > { %s440_s4 = scalar_lea.hbm %s595_s27, 128  ;;  %p442_p13 = pneg %p599_p9 }
  0x11   : > { %p441_p12 = scmp.ne.s32.totalorder %s595_s27, %s440_s4  ;;  %s445_s7 = scalar_lea.hbm %s667_s0, 256 }
  0x12   : > { %p446_p2 = scmp.lt.u32.totalorder %s595_s27, %s667_s0  ;;  %p447_p3 = scmp.lt.u32.totalorder %s445_s7, %s440_s4 }
  0x13   : > { %p443_p0 = pnand %p442_p13, %p441_p12  ;;  %p449_p5 = scmp.lt.u32.totalorder %s440_s4, %s595_s27 }
  0x14   : > { %p448_p4 = por %p447_p3, %p446_p2 }
  0x15   : > { %p444_p1 = pneg %p443_p0 }
  0x16   : > { %p450_p6 = por %p449_p5, %p448_p4 }
  0x18   : > { %p451_p8 = pnand %p450_p6, %p444_p1 }
  0x1a   : > { %454 = shalt.err (!%p451_p8)
}
  0x1b   : > { %s455_s15 = scalar_lea.vmem %s603_s29, 128  ;;  %s522_s17 = smov [#allocation2]  }
  0x1c   : > { %p456_p12 = scmp.ne.s32.totalorder %s603_s29, %s455_s15  ;;  %s460_s18 = sshll.u32 %s522_s17, 4  ;;  %s461_s18 = int_to_ptr.vmem [resolvable:$false] %s460_s18 }
  0x1d   : > { %s462_s19 = scalar_lea.vmem %s461_s18, 256  ;;  %p463_p11 = scmp.lt.s32.totalorder %s603_s29, %s461_s18 }
  0x1e   : > { %p458_p0 = pnand %p456_p12, %p442_p13  ;;  %p464_p2 = scmp.lt.s32.totalorder %s462_s19, %s455_s15 }
  0x20   : > { %p459_p10 = pneg %p458_p0  ;;  %p465_p3 = por %p464_p2, %p463_p11 }
  0x22   : > { %p466_p4 = pnand %p465_p3, %p459_p10 }
  0x24   : > { %469 = shalt.err (!%p466_p4)
}
  0x25   : > { %388 = dma.hbm_to_vmem [thread:$0]  (!%p599_p9), %s595_s27, 128, %s603_s29, %s126_s3  }
  0x26   : > { %p673_p1 = scmp.lt.s32.totalorder %s520_s14, 3  ;;  %p674_p5 = scmp.ge.s32.totalorder %s520_s14, 1 }
  0x28   : > { %p145_p13 = pnand %p674_p5, %p673_p1 }
  0x29   : > { %s150_s22 = sand.u32 (!%p145_p13), 1, %s504_s10  }
  0x2a   : > { %148 = sbr.rel (%p145_p13) target bundleno = 418 (0x1a2), region = 28  ;;  %s375_s23 = sshll.u32 (!%p145_p13), %s150_s22, 3 }
  0x2b   : > { %s151_s24 = scalar_lea.sflag (!%p145_p13), [#allocation3], %s150_s22  ;;  %s154_s25 = scalar_lea.vmem (!%p145_p13), [#allocation2], %s375_s23 }
  0x31   : > { %495 = dma.done.wait (%p582_p7), %s151_s24, 128  }
  0x32   : > { %497 = vsyncadd (%p582_p7), %s151_s24, 4294967168  ;;  %v523_v0 = vmov 0.0   ;;  %v186_v1 = vld [vmem:[%s154_s25] sm:$0xff]  ;;  %vm193_vm0 = vcmask 1043456   ;;  %vm189_vm1 = vcmask 31744   ;;  %p178_p7 = scmp.lt.s32.totalorder %s512_s12, 1 }
  0x33   : > { %262 = vmatprep.mubr.f32.mxu0 %v523_v0  ;;  %v188_v2 = vcombine.high %v186_v1, %v186_v1  ;;  %v185_v3 = vld [vmem:[%s668_s1] sm:$0xff]  ;;  %vm277_vm2 = vcmask 7168   ;;  %vm279_vm3 = vcmask 15360  }
  0x34   : > { %s683_s12 = smov (!%p178_p7, %s512_s12), 1 }
  0x35   : > { %377 = vmatprep.subr.msk.mxu0 %vm193_vm0, %v188_v2  ;;  %s376_s20 = sshll.u32 %s683_s12, 3 }
  0x36   : > { %378 = vmatpush1.msk.msra.mxu0 %vm193_vm0, %v186_v1  ;;  %s184_s30 = scalar_lea.vmem %s669_s2, %s376_s20 }
  0x37   : > { %379 = vmatmul.mubr.msk.f32.vlgmr.msra.gmra.mrb[0].mxu0 %vm189_vm1, %v185_v3 }
 0x10a   : > { %v264_v4 = vpop.f32.mrb[0].mxu0 }
 0x10b   : > { %v272_v5 = vmul.f32 %v264_v4, %v264_v4  ;;  %v266_v6 = vpop.f32.mrb[1].mxu0 }
 0x10c   : > { %v273_v7 = vmul.f32 %v266_v6, %v266_v6  ;;  %v269_v8 = vadd.f32 %v266_v6, %v264_v4 }
 0x10e   : > { %270 = vadd.xlane.f32.xlu0 %v269_v8  ;;  %v274_v9 = vadd.f32 %v273_v7, %v272_v5 }
 0x112   : > { %275 = vadd.xlane.f32.xlu0 %v274_v9 }
 0x19b   : > { %v271_v10 = vpop.xlane.xlu0 %270 }
 0x19f   : > { %v276_v11 = vpop.xlane.xlu0 %275 }
 0x1a0   : > { %v278_v12 = vsel %vm277_vm2, %v271_v10, %v276_v11 }
 0x1a1   : > { %280 = vst.msk [vmem:[%s184_s30] sm:$0xff] %vm279_vm3, %v278_v12 }
 0x1a2 PF: > { %s15_s14 = sadd.s32 1, %s520_s14   ;;  %s675_s9 = smov %s504_s10 }
 0x1a3   : > { %p12_p9 = scmp.ge.s32.totalorder %s15_s14, 4   ;;  %s676_s10 = smov %s508_s11 }
 0x1a4   : > { %s677_s11 = smov %s588_s21  ;;  %s678_s12 = smov %s516_s13 }
 0x1a5   : > { %s679_s13 = smov %s681_s16  ;;  %14 = sbr.rel (!%p12_p9) target bundleno = 4 (0x4), region = 68 }
 0x1ac   :  { %306 = vsyncpa [#allocation3], 1 }
 0x1ad   :  { %308 = vsyncpa [#allocation3 + $0x1], 1 }

</bundles_post_ra>
